<compile_context>
chip_gen: v7x
topology: tpu7x:2x2x1
jax: 0.10.0
libtpu: 0.0.40
codegen_flags: <defaults>
</compile_context>

<pallas_src>
import jax
import jax.numpy as jnp
from jax.experimental import pallas as pl
from jax.experimental.pallas import tpu as pltpu


def _round_up(x, m):
    return ((x + m - 1) // m) * m


def vae_decoder_kernel(z_ref, w1_ref, b1_ref, w2_ref, b2_ref, o_ref):
    """One batch tile: o = tanh(relu(z @ W1t + b1) @ W2t + b2).

    z_ref  : (TM, Lp)  activation tile (f32 or bf16)
    w1_ref : (Lp, H)   layer-1 weight, (in, out) layout, VMEM-resident
    b1_ref : (1, H)    f32 bias
    w2_ref : (H, Op)   layer-2 weight, (in, out) layout, lane-padded, VMEM-resident
    b2_ref : (1, Op)   f32 bias (zeros in padded lanes)
    o_ref  : (TM, Op)  output tile
    """
    h = jnp.dot(z_ref[...], w1_ref[...], preferred_element_type=jnp.float32)
    h = jnp.maximum(h + b1_ref[...], 0.0)
    y = jnp.dot(h.astype(w2_ref.dtype), w2_ref[...],
                preferred_element_type=jnp.float32)
    o_ref[...] = jnp.tanh(y + b2_ref[...]).astype(o_ref.dtype)


def vae_decode(z, w1, b1, w2, b2, *, block_m=256, weight_dtype=None):
    """Forward pass of VAE_Decoder.

    z  : (B, latent_dim)
    w1 : (512, latent_dim), b1 : (512,)          (PyTorch nn.Linear layout)
    w2 : (output_dim, 512), b2 : (output_dim,)
    block_m      : batch tile size (rounded so each tile is a multiple of 8 sublanes)
    weight_dtype : e.g. jnp.bfloat16 to halve weight DMA traffic (f32 accumulation kept)
    """
    B, L = z.shape
    H = w1.shape[0]
    O = w2.shape[0]
    out_dtype = z.dtype

    # Lane-dense padding for feature dims; sublane-aligned batch tile.
    Lp = _round_up(L, 128)
    Op = _round_up(O, 128)
    tm = min(block_m, _round_up(B, 8))
    Bp = _round_up(B, tm)

    wdt = weight_dtype if weight_dtype is not None else z.dtype

    zp = jnp.zeros((Bp, Lp), wdt).at[:B, :L].set(z.astype(wdt))
    w1t = jnp.zeros((Lp, H), wdt).at[:L, :].set(w1.T.astype(wdt))
    w2t = jnp.zeros((H, Op), wdt).at[:, :O].set(w2.T.astype(wdt))
    b1r = b1.astype(jnp.float32).reshape(1, H)
    b2r = jnp.zeros((1, Op), jnp.float32).at[:, :O].set(b2.astype(jnp.float32))

    grid = (Bp // tm,)

    w_itemsize = jnp.dtype(wdt).itemsize
    cost = pl.CostEstimate(
        flops=2 * Bp * (Lp * H + H * Op),
        transcendentals=Bp * Op,
        bytes_accessed=(zp.size + w1t.size + w2t.size) * w_itemsize
        + Bp * Op * jnp.dtype(out_dtype).itemsize,
    )

    out = pl.pallas_call(
        vae_decoder_kernel,
        out_shape=jax.ShapeDtypeStruct((Bp, Op), out_dtype),
        grid_spec=pltpu.PrefetchScalarGridSpec(
            num_scalar_prefetch=0,
            grid=grid,
            in_specs=[
                pl.BlockSpec((tm, Lp), lambda i: (i, 0)),   # z tile (pipelined per step)
                pl.BlockSpec((Lp, H), lambda i: (0, 0)),    # W1 (in,out) — VMEM-resident
                pl.BlockSpec((1, H), lambda i: (0, 0)),     # b1
                pl.BlockSpec((H, Op), lambda i: (0, 0)),    # W2 (in,out) — VMEM-resident
                pl.BlockSpec((1, Op), lambda i: (0, 0)),    # b2
            ],
            out_specs=pl.BlockSpec((tm, Op), lambda i: (i, 0)),
        ),
        compiler_params=pltpu.CompilerParams(
            dimension_semantics=("parallel",)),
        cost_estimate=cost,
    )(zp, w1t, b1r, w2t, b2r)

    return out[:B, :O]


def init_params(key, latent_dim, output_dim, hidden=512, dtype=jnp.float32):
    """Deterministic init mimicking nn.Linear default (uniform(-1/sqrt(fan_in), +))."""
    k1, k2, k3, k4 = jax.random.split(key, 4)
    s1 = 1.0 / jnp.sqrt(latent_dim)
    s2 = 1.0 / jnp.sqrt(hidden)
    w1 = jax.random.uniform(k1, (hidden, latent_dim), dtype, -s1, s1)
    b1 = jax.random.uniform(k2, (hidden,), dtype, -s1, s1)
    w2 = jax.random.uniform(k3, (output_dim, hidden), dtype, -s2, s2)
    b2 = jax.random.uniform(k4, (output_dim,), dtype, -s2, s2)
    return w1, b1, w2, b2


def reference_forward(z, w1, b1, w2, b2):
    h = jnp.maximum(z @ w1.T + b1, 0.0)
    return jnp.tanh(h @ w2.T + b2)


if __name__ == "__main__":
    latent_dim, output_dim, hidden = 32, 64, 512

    key = jax.random.PRNGKey(0)
    kz, kp, kz2 = jax.random.split(key, 3)
    w1, b1, w2, b2 = init_params(kp, latent_dim, output_dim, hidden)

    # 1) Tiny batch (degenerate single 8-row tile), f32 end-to-end — tight tolerance.
    z_small = jax.random.normal(kz, (2, latent_dim), jnp.float32)
    out_small = jax.block_until_ready(vae_decode(z_small, w1, b1, w2, b2))
    ref_small = reference_forward(z_small, w1, b1, w2, b2)
    assert out_small.shape == (2, output_dim)
    assert jnp.allclose(out_small, ref_small, atol=1e-5, rtol=1e-5), "f32 small-batch mismatch"

    # 2) Multi-tile batch exercising the pipelined / parallel grid axis (grid=(3,)).
    z_big = jax.random.normal(kz2, (192, latent_dim), jnp.float32)
    out_big = jax.block_until_ready(vae_decode(z_big, w1, b1, w2, b2, block_m=64))
    ref_big = reference_forward(z_big, w1, b1, w2, b2)
    assert out_big.shape == (192, output_dim)
    assert jnp.allclose(out_big, ref_big, atol=1e-5, rtol=1e-5), "f32 multi-tile mismatch"

    # 3) bf16 weights/activations with f32 MXU accumulation (halved weight DMA traffic).
    out_bf16 = jax.block_until_ready(
        vae_decode(z_big, w1, b1, w2, b2, block_m=64, weight_dtype=jnp.bfloat16))
    assert out_bf16.shape == (192, output_dim)
    assert jnp.allclose(out_bf16, ref_big, atol=5e-2), "bf16 path diverged beyond tolerance"

    print("KERNEL_OK")
</pallas_src>

<mosaic_0001>
module attributes {stable_mosaic.version = 11 : i64} {
  func.func @vae_decoder_kernel(%arg0: i32, %arg1: memref<8x128xf32, #tpu.memory_space<vmem>>, %arg2: memref<128x512xf32, #tpu.memory_space<vmem>>, %arg3: memref<1x512xf32, #tpu.memory_space<vmem>>, %arg4: memref<512x128xf32, #tpu.memory_space<vmem>>, %arg5: memref<1x128xf32, #tpu.memory_space<vmem>>, %arg6: memref<8x128xf32, #tpu.memory_space<vmem>>) attributes {dimension_semantics = [#tpu.dimension_semantics<parallel>], iteration_bounds = array<i64: 1>, scalar_prefetch = 0 : i64, scratch_operands = 0 : i64, tpu.core_type = #tpu.core_type<tc>, window_params = [{transform_indices = @transform_0, window_bounds = array<i64: 8, 128>}, {pipeline_mode = #tpu.pipeline_mode<synchronous>, transform_indices = @transform_1, window_bounds = array<i64: 128, 512>}, {pipeline_mode = #tpu.pipeline_mode<synchronous>, transform_indices = @transform_2, window_bounds = array<i64: 1, 512>}, {pipeline_mode = #tpu.pipeline_mode<synchronous>, transform_indices = @transform_3, window_bounds = array<i64: 512, 128>}, {pipeline_mode = #tpu.pipeline_mode<synchronous>, transform_indices = @transform_4, window_bounds = array<i64: 1, 128>}, {transform_indices = @transform_5, window_bounds = array<i64: 8, 128>}]} {
    %c0 = arith.constant 0 : index
    %c0_0 = arith.constant 0 : index
    %0 = vector.load %arg1[%c0, %c0_0] : memref<8x128xf32, #tpu.memory_space<vmem>>, vector<8x128xf32>
    %c0_1 = arith.constant 0 : index
    %c0_2 = arith.constant 0 : index
    %1 = vector.load %arg2[%c0_1, %c0_2] : memref<128x512xf32, #tpu.memory_space<vmem>>, vector<128x512xf32>
    %cst = arith.constant dense<0.000000e+00> : vector<8x512xf32>
    %2 = tpu.matmul %0, %1, %cst {dimension_numbers = #tpu.dot_dimension_numbers<[1], [0], [0], [1], [0, 0, 1, 1], [], []>} : vector<8x128xf32>, vector<128x512xf32>, vector<8x512xf32> -> vector<8x512xf32>
    %c0_3 = arith.constant 0 : index
    %c0_4 = arith.constant 0 : index
    %3 = vector.load %arg3[%c0_3, %c0_4] : memref<1x512xf32, #tpu.memory_space<vmem>>, vector<1x512xf32>
    %4 = vector.broadcast %3 : vector<1x512xf32> to vector<8x512xf32>
    %5 = arith.addf %2, %4 : vector<8x512xf32>
    %cst_5 = arith.constant 0.000000e+00 : f32
    %6 = vector.broadcast %cst_5 : f32 to vector<8x512xf32>
    %7 = arith.maximumf %5, %6 : vector<8x512xf32>
    %c0_6 = arith.constant 0 : index
    %c0_7 = arith.constant 0 : index
    %8 = vector.load %arg4[%c0_6, %c0_7] : memref<512x128xf32, #tpu.memory_space<vmem>>, vector<512x128xf32>
    %cst_8 = arith.constant dense<0.000000e+00> : vector<8x128xf32>
    %9 = tpu.matmul %7, %8, %cst_8 {dimension_numbers = #tpu.dot_dimension_numbers<[1], [0], [0], [1], [0, 0, 1, 1], [], []>} : vector<8x512xf32>, vector<512x128xf32>, vector<8x128xf32> -> vector<8x128xf32>
    %c0_9 = arith.constant 0 : index
    %c0_10 = arith.constant 0 : index
    %10 = vector.load %arg5[%c0_9, %c0_10] : memref<1x128xf32, #tpu.memory_space<vmem>>, vector<1x128xf32>
    %11 = vector.broadcast %10 : vector<1x128xf32> to vector<8x128xf32>
    %12 = arith.addf %9, %11 : vector<8x128xf32>
    %13 = math.tanh %12 : vector<8x128xf32>
    %c0_11 = arith.constant 0 : index
    %c0_12 = arith.constant 0 : index
    %14 = vector.load %arg6[%c0_11, %c0_12] : memref<8x128xf32, #tpu.memory_space<vmem>>, vector<8x128xf32>
    tpu.vector_store %arg6[%c0_11, %c0_12], %13 {strides = array<i32>} : memref<8x128xf32, #tpu.memory_space<vmem>>, vector<8x128xf32>,
    return
  }
  func.func @transform_0(%arg0: i32) -> (i32, i32) {
    %c0_i32 = arith.constant 0 : i32
    %c0_i32_0 = arith.constant 0 : i32
    return %arg0, %c0_i32 : i32, i32
  }
  func.func @transform_1(%arg0: i32) -> (i32, i32) {
    %c0_i32 = arith.constant 0 : i32
    %c0_i32_0 = arith.constant 0 : i32
    %c0_i32_1 = arith.constant 0 : i32
    return %c0_i32, %c0_i32_0 : i32, i32
  }
  func.func @transform_2(%arg0: i32) -> (i32, i32) {
    %c0_i32 = arith.constant 0 : i32
    %c0_i32_0 = arith.constant 0 : i32
    %c0_i32_1 = arith.constant 0 : i32
    return %c0_i32, %c0_i32_0 : i32, i32
  }
  func.func @transform_3(%arg0: i32) -> (i32, i32) {
    %c0_i32 = arith.constant 0 : i32
    %c0_i32_0 = arith.constant 0 : i32
    %c0_i32_1 = arith.constant 0 : i32
    return %c0_i32, %c0_i32_0 : i32, i32
  }
  func.func @transform_4(%arg0: i32) -> (i32, i32) {
    %c0_i32 = arith.constant 0 : i32
    %c0_i32_0 = arith.constant 0 : i32
    %c0_i32_1 = arith.constant 0 : i32
    return %c0_i32, %c0_i32_0 : i32, i32
  }
  func.func @transform_5(%arg0: i32) -> (i32, i32) {
    %c0_i32 = arith.constant 0 : i32
    %c0_i32_0 = arith.constant 0 : i32
    return %arg0, %c0_i32 : i32, i32
  }
}

</mosaic_0001>

<bundles_post_ra>
// kernel: tpu_custom_call.1
= control target key start
LH: loop header
LB: loop body
LE: loop exit
PB: predicated region body
PF: predicated region fallthrough
CT: control target
= control target key end

     0   :  { %10 = vsyncpa [#allocation3], 0  ;;  %s919_s0 = inlined_call_operand.hbm [shape: f32[8,128], index: 0, kind: input, shape index: {}]   ;;  %s920_s1 = inlined_call_operand.hbm [shape: f32[128,512], index: 1, kind: input, shape index: {}]   ;;  %s921_s2 = inlined_call_operand.vmem [shape: f32[1,512], index: 2, kind: input, shape index: {}]   ;;  %s922_s3 = inlined_call_operand.hbm [shape: f32[512,128], index: 3, kind: input, shape index: {}]   ;;  %s923_s4 = inlined_call_operand.vmem [shape: f32[1,128], index: 4, kind: input, shape index: {}]   ;;  %s924_s5 = inlined_call_operand.hbm [shape: f32[8,128], index: 5, kind: output, shape index: {}]  }
   0x1   :  { %11 = vsyncpa [#allocation6], 0 }
   0x2   :  { %12 = vsyncpa [#allocation4], 0  ;;  %s826_s18 = smov [#allocation5]   ;;  %s732_s22 = scalar_lea.hbm %s920_s1, 8192 }
   0x3   :  { %s28_s19 = sshll.u32 %s826_s18, 4  ;;  %p733_p0 = scmp.ne.s32.totalorder %s920_s1, %s732_s22  ;;  %s29_s19 = int_to_ptr.vmem [resolvable:$true] %s28_s19 }
   0x4   :  { %p736_p1 = scmp.lt.u32.totalorder %s732_s22, %s920_s1 }
   0x6   :  { %p738_p2 = pnand %p736_p1, %p733_p0 }
   0x8   :  { %741 = shalt.err (!%p738_p2)
}
   0x9   :  { %s742_s27 = scalar_lea.vmem %s29_s19, 8192  ;;  %p747_p4 = scmp.lt.s32.totalorder %s29_s19, %s29_s19 }
   0xa   :  { %p743_p3 = scmp.ne.s32.totalorder %s29_s19, %s742_s27  ;;  %p748_p5 = scmp.lt.s32.totalorder %s742_s27, %s742_s27 }
   0xc   :  { %p749_p6 = por %p748_p5, %p747_p4 }
   0xe   :  { %p750_p7 = pnand %p749_p6, %p743_p3 }
  0x10   :  { %753 = shalt.err (!%p750_p7)
}
  0x11   :  { %s827_s28 = smov 512   ;;  %s828_s29 = smov 32  }
  0x12   :  { %34 = dma.hbm_to_vmem [thread:$0]  %s920_s1, 8192, %s29_s19, [#allocation6], %s827_s28, %s827_s28, %s828_s29  }
  0x13   :  { %s829_s7 = smov [#allocation2]   ;;  %s830_s9 = smov [#allocation7]  }
  0x14   :  { %s19_s8 = sshll.u32 %s829_s7, 4  ;;  %s42_s10 = sshll.u32 %s830_s9, 4  ;;  %s20_s8 = int_to_ptr.vmem [resolvable:$true] %s19_s8  ;;  %s43_s10 = int_to_ptr.vmem [resolvable:$true] %s42_s10 }
  0x15   :  { %s754_s13 = scalar_lea.hbm %s919_s0, 128 }
  0x16   :  { %p755_p8 = scmp.ne.s32.totalorder %s919_s0, %s754_s13  ;;  %p758_p9 = scmp.lt.u32.totalorder %s754_s13, %s919_s0 }
  0x18   :  { %p760_p10 = pnand %p758_p9, %p755_p8 }
  0x1a   :  { %763 = shalt.err (!%p760_p10)
}
  0x1b   :  { %s764_s1 = scalar_lea.vmem %s20_s8, 128  ;;  %p769_p12 = scmp.lt.s32.totalorder %s20_s8, %s20_s8 }
  0x1c   :  { %p765_p11 = scmp.ne.s32.totalorder %s20_s8, %s764_s1  ;;  %p770_p13 = scmp.lt.s32.totalorder %s764_s1, %s764_s1 }
  0x1e   :  { %p771_p0 = por %p770_p13, %p769_p12 }
  0x20   :  { %p772_p1 = pnand %p771_p0, %p765_p11 }
  0x22   :  { %775 = shalt.err (!%p772_p1)
}
  0x23   :  { %22 = dma.hbm_to_vmem [thread:$0]  %s919_s0, 128, %s20_s8, [#allocation3]  }
  0x24   :  { %s776_s22 = scalar_lea.hbm %s922_s3, 8192 }
  0x25   :  { %p777_p2 = scmp.ne.s32.totalorder %s922_s3, %s776_s22  ;;  %p780_p3 = scmp.lt.u32.totalorder %s776_s22, %s922_s3 }
  0x27   :  { %p782_p4 = pnand %p780_p3, %p777_p2 }
  0x29   :  { %785 = shalt.err (!%p782_p4)
}
  0x2a   :  { %s786_s27 = scalar_lea.vmem %s43_s10, 8192  ;;  %p791_p6 = scmp.lt.s32.totalorder %s43_s10, %s43_s10 }
  0x2b   :  { %p787_p5 = scmp.ne.s32.totalorder %s43_s10, %s786_s27  ;;  %p792_p7 = scmp.lt.s32.totalorder %s786_s27, %s786_s27 }
  0x2d   :  { %p793_p8 = por %p792_p7, %p791_p6 }
  0x2f   :  { %p794_p9 = pnand %p793_p8, %p787_p5 }
  0x31   :  { %797 = shalt.err (!%p794_p9)
}
  0x32   :  { %s831_s0 = smov 128   ;;  %s832_s28 = smov 8  }
  0x33   :  { %48 = dma.hbm_to_vmem [thread:$0]  %s922_s3, 8192, %s43_s10, [#allocation6], %s831_s0, %s831_s0, %s832_s28  }
  0x34   :  { %820 = dma.done.wait [#allocation3], 128  }
  0x35   :  { %821 = vsyncadd [#allocation3], 4294967168 }
  0x36   :  { %822 = dma.done.wait [#allocation6], 16384  }
  0x37   :  { %823 = vsyncadd [#allocation6], 4294950912  ;;  %v833_v0 = vmov 0.0   ;;  %v62_v1 = vld [vmem:[#allocation5 + $0x8] sm:$0xff]  ;;  %v64_v3 = vld [vmem:[#allocation5 + $0x18] sm:$0xff]  ;;  %s834_s8 = smov [#allocation8]  }
  0x38   :  { %211 = vmatprep.mubr.f32.mxu0 %v833_v0  ;;  %282 = vmatprep.mubr.f32.mxu1 %v833_v0  ;;  %v66_v2 = vld [vmem:[#allocation5 + $0x28] sm:$0xff]  ;;  %v68_v5 = vld [vmem:[#allocation5 + $0x38] sm:$0xff]  ;;  %v61_v6 = vld [vmem:[#allocation5] sm:$0xff]  ;;  %s512_s9 = sshll.u32 %s834_s8, 4  ;;  %s513_s9 = int_to_ptr.vmem [resolvable:$true] %s512_s9 }
  0x39   :  { %v593_v4 = vpack.c.bf16 %v66_v2, %v62_v1  ;;  %v65_v7 = vld [vmem:[#allocation5 + $0x20] sm:$0xff]  ;;  %v625_v8 = vpack.c.bf16 %v68_v5, %v64_v3  ;;  %v63_v10 = vld [vmem:[#allocation5 + $0x10] sm:$0xff]  ;;  %v70_v12 = vld [vmem:[#allocation5 + $0x48] sm:$0xff]  ;;  %s798_s10 = scalar_lea.vmem %s513_s9, 128  ;;  %p803_p11 = scmp.lt.s32.totalorder %s513_s9, %s513_s9 }
  0x3a   :  { %v595_v9 = vpack.c.bf16 %v65_v7, %v61_v6  ;;  %v67_v11 = vld [vmem:[#allocation5 + $0x30] sm:$0xff]  ;;  %v74_v14 = vld [vmem:[#allocation5 + $0x68] sm:$0xff]  ;;  %v72_v15 = vld [vmem:[#allocation5 + $0x58] sm:$0xff]  ;;  %p799_p10 = scmp.ne.s32.totalorder %s513_s9, %s798_s10  ;;  %p804_p12 = scmp.lt.s32.totalorder %s798_s10, %s798_s10 }
  0x3b   :  { %594 = vmatprep.subr.bf16.mxu0 %v593_v4  ;;  %v627_v13 = vpack.c.bf16 %v67_v11, %v63_v10  ;;  %v76_v16 = vld [vmem:[#allocation5 + $0x78] sm:$0xff]  ;;  %626 = vmatprep.subr.bf16.mxu1 %v625_v8  ;;  %v597_v17 = vpack.c.bf16 %v74_v14, %v70_v12  ;;  %v69_v19 = vld [vmem:[#allocation5 + $0x40] sm:$0xff]  ;;  %v71_v21 = vld [vmem:[#allocation5 + $0x50] sm:$0xff] }
  0x3c   :  { %596 = vmatpush1.bf16.msra.mxu0 %v595_v9  ;;  %v629_v18 = vpack.c.bf16 %v76_v16, %v72_v15  ;;  %v73_v20 = vld [vmem:[#allocation5 + $0x60] sm:$0xff]  ;;  %v75_v23 = vld [vmem:[#allocation5 + $0x70] sm:$0xff]  ;;  %v78_v24 = vld [vmem:[#allocation5 + $0x88] sm:$0xff]  ;;  %p805_p13 = por %p804_p12, %p803_p11 }
  0x3d   :  { %628 = vmatpush1.bf16.msra.mxu1 %v627_v13  ;;  %v599_v22 = vpack.c.bf16 %v73_v20, %v69_v19  ;;  %v82_v25 = vld [vmem:[#allocation5 + $0xa8] sm:$0xff]  ;;  %598 = vmatprep.subr.bf16.mxu0 %v597_v17  ;;  %v631_v26 = vpack.c.bf16 %v75_v23, %v71_v21  ;;  %v80_v28 = vld [vmem:[#allocation5 + $0x98] sm:$0xff]  ;;  %v77_v30 = vld [vmem:[#allocation5 + $0x80] sm:$0xff] }
  0x3e   :  { %630 = vmatprep.subr.bf16.mxu1 %v629_v18  ;;  %v601_v27 = vpack.c.bf16 %v82_v25, %v78_v24  ;;  %v84_v29 = vld [vmem:[#allocation5 + $0xb8] sm:$0xff]  ;;  %v81_v32 = vld [vmem:[#allocation5 + $0xa0] sm:$0xff]  ;;  %v79_v33 = vld [vmem:[#allocation5 + $0x90] sm:$0xff]  ;;  %p806_p0 = pnand %p805_p13, %p799_p10 }
  0x3f   :  { %v633_v31 = vpack.c.bf16 %v84_v29, %v80_v28  ;;  %v83_v34 = vld [vmem:[#allocation5 + $0xb0] sm:$0xff]  ;;  %v603_v35 = vpack.c.bf16 %v81_v32, %v77_v30  ;;  %v86_v36 = vld [vmem:[#allocation5 + $0xc8] sm:$0xff]  ;;  %v88_v38 = vld [vmem:[#allocation5 + $0xd8] sm:$0xff] }
  0x40   :  { %600 = vmatpush1.bf16.msra.mxu0 %v599_v22  ;;  %v90_v37 = vld [vmem:[#allocation5 + $0xe8] sm:$0xff]  ;;  %v635_v39 = vpack.c.bf16 %v83_v34, %v79_v33  ;;  %v92_v41 = vld [vmem:[#allocation5 + $0xf8] sm:$0xff]  ;;  %v85_v42 = vld [vmem:[#allocation5 + $0xc0] sm:$0xff] }
  0x41   :  { %632 = vmatpush1.bf16.msra.mxu1 %v631_v26  ;;  %602 = vmatprep.subr.bf16.mxu0 %v601_v27  ;;  %v605_v40 = vpack.c.bf16 %v90_v37, %v86_v36  ;;  %v89_v43 = vld [vmem:[#allocation5 + $0xe0] sm:$0xff]  ;;  %v637_v44 = vpack.c.bf16 %v92_v41, %v88_v38  ;;  %v87_v45 = vld [vmem:[#allocation5 + $0xd0] sm:$0xff]  ;;  %v94_v47 = vld [vmem:[#allocation5 + $0x108] sm:$0xff] }
  0x42   :  { %634 = vmatprep.subr.bf16.mxu1 %v633_v31  ;;  %v91_v46 = vld [vmem:[#allocation5 + $0xf0] sm:$0xff]  ;;  %v98_v48 = vld [vmem:[#allocation5 + $0x128] sm:$0xff]  ;;  %v96_v49 = vld [vmem:[#allocation5 + $0x118] sm:$0xff]  ;;  %v607_v51 = vpack.c.bf16 %v89_v43, %v85_v42 }
  0x43   :  { %v100_v50 = vld [vmem:[#allocation5 + $0x138] sm:$0xff]  ;;  %v639_v52 = vpack.c.bf16 %v91_v46, %v87_v45  ;;  %v609_v53 = vpack.c.bf16 %v98_v48, %v94_v47  ;;  %v93_v54 = vld [vmem:[#allocation5 + $0x100] sm:$0xff]  ;;  %v95_v56 = vld [vmem:[#allocation5 + $0x110] sm:$0xff] }
  0x44   :  { %604 = vmatpush1.bf16.msra.mxu0 %v603_v35  ;;  %v97_v55 = vld [vmem:[#allocation5 + $0x120] sm:$0xff]  ;;  %v641_v57 = vpack.c.bf16 %v100_v50, %v96_v49  ;;  %v99_v58 = vld [vmem:[#allocation5 + $0x130] sm:$0xff]  ;;  %v102_v59 = vld [vmem:[#allocation5 + $0x148] sm:$0xff] }
  0x45   :  { %636 = vmatpush1.bf16.msra.mxu1 %v635_v39  ;;  %606 = vmatprep.subr.bf16.mxu0 %v605_v40  ;;  %v106_v60 = vld [vmem:[#allocation5 + $0x168] sm:$0xff]  ;;  %v104_v61 = vld [vmem:[#allocation5 + $0x158] sm:$0xff]  ;;  %v611_v63 = vpack.c.bf16 %v97_v55, %v93_v54  ;;  %v643_v0 = vpack.c.bf16 %v99_v58, %v95_v56  ;;  %v101_v2 = vld [vmem:[#allocation5 + $0x140] sm:$0xff] }
  0x46   :  { %638 = vmatprep.subr.bf16.mxu1 %v637_v44  ;;  %v108_v62 = vld [vmem:[#allocation5 + $0x178] sm:$0xff]  ;;  %v613_v1 = vpack.c.bf16 %v106_v60, %v102_v59  ;;  %v105_v3 = vld [vmem:[#allocation5 + $0x160] sm:$0xff]  ;;  %v103_v4 = vld [vmem:[#allocation5 + $0x150] sm:$0xff] }
  0x47   :  { %v645_v5 = vpack.c.bf16 %v108_v62, %v104_v61  ;;  %v107_v6 = vld [vmem:[#allocation5 + $0x170] sm:$0xff]  ;;  %v110_v7 = vld [vmem:[#allocation5 + $0x188] sm:$0xff]  ;;  %v112_v9 = vld [vmem:[#allocation5 + $0x198] sm:$0xff]  ;;  %v615_v11 = vpack.c.bf16 %v105_v3, %v101_v2 }
  0x48   :  { %608 = vmatpush1.bf16.msra.mxu0 %v607_v51  ;;  %v114_v8 = vld [vmem:[#allocation5 + $0x1a8] sm:$0xff]  ;;  %v116_v10 = vld [vmem:[#allocation5 + $0x1b8] sm:$0xff]  ;;  %v647_v12 = vpack.c.bf16 %v107_v6, %v103_v4  ;;  %v109_v14 = vld [vmem:[#allocation5 + $0x180] sm:$0xff] }
  0x49   :  { %640 = vmatpush1.bf16.msra.mxu1 %v639_v52  ;;  %610 = vmatprep.subr.bf16.mxu0 %v609_v53  ;;  %v617_v13 = vpack.c.bf16 %v114_v8, %v110_v7  ;;  %v113_v15 = vld [vmem:[#allocation5 + $0x1a0] sm:$0xff]  ;;  %v111_v16 = vld [vmem:[#allocation5 + $0x190] sm:$0xff]  ;;  %v649_v17 = vpack.c.bf16 %v116_v10, %v112_v9  ;;  %v118_v19 = vld [vmem:[#allocation5 + $0x1c8] sm:$0xff] }
  0x4a   :  { %642 = vmatprep.subr.bf16.mxu1 %v641_v57  ;;  %v115_v18 = vld [vmem:[#allocation5 + $0x1b0] sm:$0xff]  ;;  %v122_v20 = vld [vmem:[#allocation5 + $0x1e8] sm:$0xff]  ;;  %v120_v21 = vld [vmem:[#allocation5 + $0x1d8] sm:$0xff]  ;;  %v619_v23 = vpack.c.bf16 %v113_v15, %v109_v14 }
  0x4b   :  { %v124_v22 = vld [vmem:[#allocation5 + $0x1f8] sm:$0xff]  ;;  %v651_v24 = vpack.c.bf16 %v115_v18, %v111_v16  ;;  %v621_v25 = vpack.c.bf16 %v122_v20, %v118_v19  ;;  %v117_v26 = vld [vmem:[#allocation5 + $0x1c0] sm:$0xff]  ;;  %v119_v28 = vld [vmem:[#allocation5 + $0x1d0] sm:$0xff] }
  0x4c   :  { %612 = vmatpush1.bf16.msra.mxu0 %v611_v63  ;;  %v121_v27 = vld [vmem:[#allocation5 + $0x1e0] sm:$0xff]  ;;  %v653_v29 = vpack.c.bf16 %v124_v22, %v120_v21  ;;  %v123_v30 = vld [vmem:[#allocation5 + $0x1f0] sm:$0xff]  ;;  %v310_v32 = vld [vmem:[#allocation7 + $0x88] sm:$0xff] }
  0x4d   :  { %644 = vmatpush1.bf16.msra.mxu1 %v643_v0  ;;  %614 = vmatprep.subr.bf16.mxu0 %v613_v1  ;;  %v309_v31 = vld [vmem:[#allocation7 + $0x80] sm:$0xff]  ;;  %v342_v34 = vld [vmem:[#allocation7 + $0x188] sm:$0xff]  ;;  %v623_v35 = vpack.c.bf16 %v121_v27, %v117_v26  ;;  %v655_v36 = vpack.c.bf16 %v123_v30, %v119_v28  ;;  %v311_v43 = vld [vmem:[#allocation7 + $0x90] sm:$0xff] }
  0x4e   :  { %646 = vmatprep.subr.bf16.mxu1 %v645_v5  ;;  %v341_v33 = vld [vmem:[#allocation7 + $0x180] sm:$0xff]  ;;  %v657_v37 = vpack.c.bf16 %v310_v32, %v309_v31  ;;  %v294_v39 = vld [vmem:[#allocation7 + $0x8] sm:$0xff]  ;;  %v312_v44 = vld [vmem:[#allocation7 + $0x98] sm:$0xff] }
  0x4f   :  { %v293_v38 = vld [vmem:[#allocation7] sm:$0xff]  ;;  %v689_v41 = vpack.c.bf16 %v342_v34, %v341_v33  ;;  %v326_v42 = vld [vmem:[#allocation7 + $0x108] sm:$0xff]  ;;  %v343_v45 = vld [vmem:[#allocation7 + $0x190] sm:$0xff]  ;;  %v661_v50 = vpack.c.bf16 %v312_v44, %v311_v43 }
  0x50   :  { %616 = vmatpush1.bf16.msra.mxu0 %v615_v11  ;;  %v325_v40 = vld [vmem:[#allocation7 + $0x100] sm:$0xff]  ;;  %v344_v46 = vld [vmem:[#allocation7 + $0x198] sm:$0xff]  ;;  %v659_v48 = vpack.c.bf16 %v294_v39, %v293_v38  ;;  %v295_v51 = vld [vmem:[#allocation7 + $0x10] sm:$0xff] }
  0x51   :  { %648 = vmatpush1.bf16.msra.mxu1 %v647_v12  ;;  %618 = vmatprep.subr.bf16.mxu0 %v617_v13  ;;  %v60_v47 = vld [vmem:[#allocation2] sm:$0xff]  ;;  %v691_v49 = vpack.c.bf16 %v326_v42, %v325_v40  ;;  %v327_v53 = vld [vmem:[#allocation7 + $0x110] sm:$0xff]  ;;  %v693_v54 = vpack.c.bf16 %v344_v46, %v343_v45  ;;  %v313_v56 = vld [vmem:[#allocation7 + $0xa0] sm:$0xff] }
  0x52   :  { %650 = vmatprep.subr.bf16.mxu1 %v649_v17  ;;  %v296_v52 = vld [vmem:[#allocation7 + $0x18] sm:$0xff]  ;;  %v314_v57 = vld [vmem:[#allocation7 + $0xa8] sm:$0xff]  ;;  %v345_v58 = vld [vmem:[#allocation7 + $0x1a0] sm:$0xff] }
  0x53   :  { %v328_v55 = vld [vmem:[#allocation7 + $0x118] sm:$0xff]  ;;  %v346_v59 = vld [vmem:[#allocation7 + $0x1a8] sm:$0xff]  ;;  %v663_v60 = vpack.c.bf16 %v296_v52, %v295_v51  ;;  %v665_v62 = vpack.c.bf16 %v314_v57, %v313_v56  ;;  %v297_v63 = vld [vmem:[#allocation7 + $0x20] sm:$0xff] }
  0x54   :  { %620 = vmatpush1.bf16.msra.mxu0 %v619_v23  ;;  %v695_v61 = vpack.c.bf16 %v328_v55, %v327_v53  ;;  %v298_v0 = vld [vmem:[#allocation7 + $0x28] sm:$0xff]  ;;  %v329_v1 = vld [vmem:[#allocation7 + $0x120] sm:$0xff]  ;;  %v697_v2 = vpack.c.bf16 %v346_v59, %v345_v58  ;;  %v315_v4 = vld [vmem:[#allocation7 + $0xb0] sm:$0xff] }
  0x55   :  { %652 = vmatpush1.bf16.msra.mxu1 %v651_v24  ;;  %622 = vmatprep.subr.bf16.mxu0 %v621_v25  ;;  %v330_v3 = vld [vmem:[#allocation7 + $0x128] sm:$0xff]  ;;  %v316_v5 = vld [vmem:[#allocation7 + $0xb8] sm:$0xff]  ;;  %v347_v6 = vld [vmem:[#allocation7 + $0x1b0] sm:$0xff]  ;;  %v667_v8 = vpack.c.bf16 %v298_v0, %v297_v63 }
  0x56   :  { %654 = vmatprep.subr.bf16.mxu1 %v653_v29  ;;  %v348_v7 = vld [vmem:[#allocation7 + $0x1b8] sm:$0xff]  ;;  %v699_v9 = vpack.c.bf16 %v330_v3, %v329_v1  ;;  %v669_v10 = vpack.c.bf16 %v316_v5, %v315_v4  ;;  %v299_v11 = vld [vmem:[#allocation7 + $0x30] sm:$0xff]  ;;  %v317_v16 = vld [vmem:[#allocation7 + $0xc0] sm:$0xff] }
  0x57   :  { %v300_v12 = vld [vmem:[#allocation7 + $0x38] sm:$0xff]  ;;  %v331_v13 = vld [vmem:[#allocation7 + $0x130] sm:$0xff]  ;;  %v701_v14 = vpack.c.bf16 %v348_v7, %v347_v6  ;;  %v318_v17 = vld [vmem:[#allocation7 + $0xc8] sm:$0xff] }
  0x58   :  { %624 = vmatpush1.bf16.msra.mxu0 %v623_v35  ;;  %v332_v15 = vld [vmem:[#allocation7 + $0x138] sm:$0xff]  ;;  %v349_v18 = vld [vmem:[#allocation7 + $0x1c0] sm:$0xff]  ;;  %v350_v19 = vld [vmem:[#allocation7 + $0x1c8] sm:$0xff]  ;;  %v671_v20 = vpack.c.bf16 %v300_v12, %v299_v11  ;;  %v673_v22 = vpack.c.bf16 %v318_v17, %v317_v16 }
  0x59   :  { %656 = vmatpush1.bf16.msra.mxu1 %v655_v36  ;;  %658 = vmatprep.subr.bf16.mxu0 %v657_v37  ;;  %v703_v21 = vpack.c.bf16 %v332_v15, %v331_v13  ;;  %v301_v23 = vld [vmem:[#allocation7 + $0x40] sm:$0xff]  ;;  %v302_v24 = vld [vmem:[#allocation7 + $0x48] sm:$0xff]  ;;  %v705_v26 = vpack.c.bf16 %v350_v19, %v349_v18  ;;  %v319_v28 = vld [vmem:[#allocation7 + $0xd0] sm:$0xff] }
  0x5a   :  { %690 = vmatprep.subr.bf16.mxu1 %v689_v41  ;;  %v333_v25 = vld [vmem:[#allocation7 + $0x140] sm:$0xff]  ;;  %v334_v27 = vld [vmem:[#allocation7 + $0x148] sm:$0xff]  ;;  %v320_v29 = vld [vmem:[#allocation7 + $0xd8] sm:$0xff]  ;;  %v675_v32 = vpack.c.bf16 %v302_v24, %v301_v23 }
  0x5b   :  { %212 = vmatmul.mubr.f32.vlgmr.msra.gmra.mrb[0].mxu0 %v60_v47  ;;  %v351_v30 = vld [vmem:[#allocation7 + $0x1d0] sm:$0xff]  ;;  %v352_v31 = vld [vmem:[#allocation7 + $0x1d8] sm:$0xff]  ;;  %v707_v33 = vpack.c.bf16 %v334_v27, %v333_v25  ;;  %v677_v34 = vpack.c.bf16 %v320_v29, %v319_v28  ;;  %v321_v40 = vld [vmem:[#allocation7 + $0xe0] sm:$0xff] }
  0x5c   :  { %283 = vmatmul.mubr.f32.vlgmr.msra.gmra.mrb[0].mxu1 %v60_v47  ;;  %660 = vmatpush3.bf16.msra.mxu0 %v659_v48  ;;  %v303_v35 = vld [vmem:[#allocation7 + $0x50] sm:$0xff]  ;;  %v304_v36 = vld [vmem:[#allocation7 + $0x58] sm:$0xff]  ;;  %v709_v38 = vpack.c.bf16 %v352_v31, %v351_v30  ;;  %v322_v41 = vld [vmem:[#allocation7 + $0xe8] sm:$0xff] }
  0x5d   :  { %692 = vmatpush3.bf16.msra.mxu1 %v691_v49  ;;  %662 = vmatprep.subr.bf16.mxu0 %v661_v50  ;;  %v335_v37 = vld [vmem:[#allocation7 + $0x150] sm:$0xff]  ;;  %v336_v39 = vld [vmem:[#allocation7 + $0x158] sm:$0xff]  ;;  %v353_v42 = vld [vmem:[#allocation7 + $0x1e0] sm:$0xff]  ;;  %v679_v44 = vpack.c.bf16 %v304_v36, %v303_v35  ;;  %v681_v46 = vpack.c.bf16 %v322_v41, %v321_v40 }
  0x5e   :  { %694 = vmatprep.subr.bf16.mxu1 %v693_v54  ;;  %v354_v43 = vld [vmem:[#allocation7 + $0x1e8] sm:$0xff]  ;;  %v711_v45 = vpack.c.bf16 %v336_v39, %v335_v37  ;;  %v305_v48 = vld [vmem:[#allocation7 + $0x60] sm:$0xff]  ;;  %v323_v54 = vld [vmem:[#allocation7 + $0xf0] sm:$0xff] }
  0x5f   :  { %v713_v47 = vpack.c.bf16 %v354_v43, %v353_v42  ;;  %v306_v49 = vld [vmem:[#allocation7 + $0x68] sm:$0xff]  ;;  %v337_v50 = vld [vmem:[#allocation7 + $0x160] sm:$0xff]  ;;  %v324_v55 = vld [vmem:[#allocation7 + $0xf8] sm:$0xff] }
  0x60   :  { %664 = vmatpush3.bf16.msra.mxu0 %v663_v60  ;;  %v683_v51 = vpack.c.bf16 %v306_v49, %v305_v48  ;;  %v338_v52 = vld [vmem:[#allocation7 + $0x168] sm:$0xff]  ;;  %v355_v56 = vld [vmem:[#allocation7 + $0x1f0] sm:$0xff]  ;;  %v685_v57 = vpack.c.bf16 %v324_v55, %v323_v54  ;;  %v356_v58 = vld [vmem:[#allocation7 + $0x1f8] sm:$0xff] }
  0x61   :  { %696 = vmatpush3.bf16.msra.mxu1 %v695_v61  ;;  %666 = vmatprep.subr.bf16.mxu0 %v665_v62  ;;  %v715_v53 = vpack.c.bf16 %v338_v52, %v337_v50  ;;  %v307_v59 = vld [vmem:[#allocation7 + $0x70] sm:$0xff]  ;;  %v308_v60 = vld [vmem:[#allocation7 + $0x78] sm:$0xff]  ;;  %v717_v61 = vpack.c.bf16 %v356_v58, %v355_v56 }
  0x62   :  { %698 = vmatprep.subr.bf16.mxu1 %v697_v2  ;;  %v687_v62 = vpack.c.bf16 %v308_v60, %v307_v59  ;;  %v339_v63 = vld [vmem:[#allocation7 + $0x170] sm:$0xff]  ;;  %v340_v0 = vld [vmem:[#allocation7 + $0x178] sm:$0xff]  ;;  %v127_v2 = vlaneseq }
  0x63   :  { %v719_v1 = vpack.c.bf16 %v340_v0, %v339_v63  ;;  %v125_v5 = vld [vmem:[%s921_s2] sm:$0xf] }
  0x64   :  { %668 = vmatpush3.bf16.msra.mxu0 %v667_v8  ;;  %v128_v3 = vshrl.u32 %v127_v2, 7  ;;  %v522_v27 = vld [vmem:[%s923_s4] ss:$0 sm:$0xff] }
  0x65   :  { %700 = vmatpush3.bf16.msra.mxu1 %v699_v9  ;;  %670 = vmatprep.subr.bf16.mxu0 %v669_v10 }
  0x66   :  { %702 = vmatprep.subr.bf16.mxu1 %v701_v14  ;;  %v129_v4 = vsub.s32 0, %v128_v3  ;;  %v137_v6 = vsub.s32 2, %v128_v3  ;;  %v133_v7 = vsub.s32 1, %v128_v3  ;;  %v141_v8 = vsub.s32 3, %v128_v3 }
  0x68   :  { %672 = vmatpush3.bf16.msra.mxu0 %v671_v20  ;;  %v130_v9 = vrot.slane %v125_v5, %v129_v4  ;;  %v138_v10 = vrot.slane %v125_v5, %v137_v6  ;;  %v134_v11 = vrot.slane %v125_v5, %v133_v7  ;;  %v142_v12 = vrot.slane %v125_v5, %v141_v8 }
  0x69   :  { %704 = vmatpush3.bf16.msra.mxu1 %v703_v21  ;;  %674 = vmatprep.subr.bf16.mxu0 %v673_v22 }
  0x6a   :  { %706 = vmatprep.subr.bf16.mxu1 %v705_v26 }
  0x6c   :  { %676 = vmatpush3.bf16.msra.mxu0 %v675_v32 }
  0x6d   :  { %708 = vmatpush3.bf16.msra.mxu1 %v707_v33  ;;  %678 = vmatprep.subr.bf16.mxu0 %v677_v34 }
  0x6e   :  { %710 = vmatprep.subr.bf16.mxu1 %v709_v38 }
  0x70   :  { %680 = vmatpush3.bf16.msra.mxu0 %v679_v44 }
  0x71   :  { %712 = vmatpush3.bf16.msra.mxu1 %v711_v45  ;;  %682 = vmatprep.subr.bf16.mxu0 %v681_v46 }
  0x72   :  { %714 = vmatprep.subr.bf16.mxu1 %v713_v47 }
  0x74   :  { %684 = vmatpush3.bf16.msra.mxu0 %v683_v51 }
  0x75   :  { %716 = vmatpush3.bf16.msra.mxu1 %v715_v53  ;;  %686 = vmatprep.subr.bf16.mxu0 %v685_v57 }
  0x76   :  { %718 = vmatprep.subr.bf16.mxu1 %v717_v61 }
  0x78   :  { %688 = vmatpush3.bf16.msra.mxu0 %v687_v62 }
  0x79   :  { %720 = vmatpush3.bf16.msra.mxu1 %v719_v1 }
 0x12e   :  { %v213_v13 = vpop.f32.mrb[0].mxu0 }
 0x12f   :  { %v214_v14 = vadd.f32 %v213_v13, %v130_v9  ;;  %v284_v15 = vpop.f32.mrb[0].mxu1  ;;  %v215_v16 = vpop.f32.mrb[1].mxu0 }
 0x130   :  { %v285_v17 = vadd.f32 %v284_v15, %v138_v10  ;;  %v216_v18 = vadd.f32 %v215_v16, %v134_v11  ;;  %v286_v19 = vpop.f32.mrb[1].mxu1 }
 0x131   :  { %v287_v20 = vadd.f32 %v286_v19, %v142_v12  ;;  %v289_v23 = vmax.f32 %v214_v14, 0.0 }
 0x132   :  { %v291_v21 = vmax.f32 %v285_v17, 0.0  ;;  %v290_v22 = vmax.f32 %v216_v18, 0.0 }
 0x133   :  { %v292_v24 = vmax.f32 %v287_v20, 0.0 }
 0x134   :  { %428 = vmatprep.mubr.f32.mxu0 %v290_v22 }
 0x135   :  { %498 = vmatprep.mubr.f32.mxu1 %v292_v24  ;;  %429 = vmatmul.mubr.f32.vlgmr.msra.gmra.mrb[2].mxu0 %v289_v23 }
 0x136   :  { %499 = vmatmul.mubr.f32.vlgmr.msra.gmra.mrb[2].mxu1 %v291_v21 }
 0x208   :  { %v555_v25 = vpop.f32.mrb[2].mxu0 }
 0x209   :  { %v590_v26 = vpop.f32.mrb[2].mxu1  ;;  %v556_v28 = vpop.f32.mrb[3].mxu0 }
 0x20a   :  { %v557_v29 = vadd.f32 %v556_v28, %v555_v25  ;;  %v591_v30 = vpop.f32.mrb[3].mxu1 }
 0x20b   :  { %v592_v31 = vadd.f32 %v591_v30, %v590_v26 }
 0x20c   :  { %v431_v32 = vadd.f32 %v557_v29, %v522_v27 }
 0x20e   :  { %v501_v33 = vadd.f32 %v592_v31, %v431_v32 }
 0x210   :  { %730 = vtanh.f32 %v501_v33 }
 0x21a   :  { %v731_v34 = vpop.eup %730 }
 0x21b   :  { %505 = vst [vmem:[#allocation8] sm:$0xff] %v731_v34 }
 0x21c   :  { %809 = shalt.err (!%p806_p0)
}
 0x21d   :  { %s810_s12 = scalar_lea.hbm %s924_s5, 128 }
 0x21e   :  { %p811_p1 = scmp.ne.s32.totalorder %s924_s5, %s810_s12  ;;  %p814_p2 = scmp.lt.u32.totalorder %s810_s12, %s924_s5 }
 0x220   :  { %p816_p3 = pnand %p814_p2, %p811_p1 }
 0x222   :  { %819 = shalt.err (!%p816_p3)
}
 0x223   :  { %515 = dma.vmem_to_hbm [thread:$0]  %s513_s9, 128, %s924_s5, [#allocation4]  }
 0x224   :  { %824 = dma.done.wait [#allocation4], 128  }
 0x225   :  { %825 = vsyncadd [#allocation4], 4294967168 }
 0x226   :  { %519 = vsyncpa [#allocation3], 1 }
 0x227   :  { %520 = vsyncpa [#allocation6], 1 }
 0x228   :  { %521 = vsyncpa [#allocation4], 1 }

</bundles_post_ra>
